<compile_context>
chip_gen: v5e
topology: v5e:2x2
jax: 0.10.0
libtpu: 0.0.40
codegen_flags: <defaults>
</compile_context>

<pallas_src>
import functools

import jax
import jax.numpy as jnp
from jax.experimental import pallas as pl
from jax.experimental.pallas import tpu as pltpu

LANES = 128
# ~4 MiB per input per pipeline buffer; rows derived from the input dtype.
TARGET_BLOCK_BYTES = 4 * 1024 * 1024
VMEM_LIMIT_BYTES = 48 << 20
# Below this element count a single plain-jnp evaluation beats the fixed
# pallas_call launch + one-grid-step cost (a few microseconds).
SMALL_INPUT_FALLBACK_ELEMS = 65536


def _bce_core(x, t):
    """Unweighted, un-negated BCE term: t*log2(x) + (1-t)*log2(1-x).

    Matches torch.clamp(torch.log2(.), min=-100, max=100) for probability
    inputs: log2 of a value in (0, 1] is <= 0, so the +100 upper clamp can
    never fire and jnp.maximum suffices (saves 2 VPU ops/elem; relevant on
    v7x where VALU is nearly co-binding with HBM).
    """
    x = x.astype(jnp.float32)
    t = t.astype(jnp.float32)
    logx = jnp.maximum(jnp.log2(x), -100.0)
    loginvx = jnp.maximum(jnp.log2(1.0 - x), -100.0)
    # Algebraically equal to t*logx + (1-t)*loginvx, one fewer mul/sub.
    return loginvx + t * (logx - loginvx)


def _bce_partial_kernel(x_ref, t_ref, o_ref, *, total_rows, block_rows):
    """Per-block partial sum of the BCE term -> (1, 128) lane-dense output.

    The masked branch is only emitted when the row count does not divide the
    block size, and only the last (ragged) grid block pays for it.
    """
    core = _bce_core(x_ref[...], t_ref[...])

    if total_rows % block_rows == 0:
        # Every block fully valid: no masking anywhere in the hot path.
        o_ref[0] = jnp.sum(core, axis=0, keepdims=True)
    else:
        i = pl.program_id(0)
        is_last = i == pl.num_programs(0) - 1

        @pl.when(jnp.logical_not(is_last))
        def _():
            o_ref[0] = jnp.sum(core, axis=0, keepdims=True)

        @pl.when(is_last)
        def _():
            # Rows past `total_rows` in the ragged last block hold stale VMEM
            # data; jnp.where discards any NaN they produce before the sum.
            row = (jax.lax.broadcasted_iota(jnp.int32, core.shape, 0)
                   + i * block_rows)
            masked = jnp.where(row < total_rows, core, 0.0)
            o_ref[0] = jnp.sum(masked, axis=0, keepdims=True)


def _bce_core_sum_pallas(x2, t2):
    """Sum of the BCE core term over a (rows, 128) lane-aligned array pair."""
    rows = x2.shape[0]
    itemsize = max(jnp.dtype(x2.dtype).itemsize, jnp.dtype(t2.dtype).itemsize)
    max_block_rows = max(8, (TARGET_BLOCK_BYTES // (LANES * itemsize)) // 8 * 8)
    block_rows = rows if rows <= max_block_rows else max_block_rows
    num_blocks = pl.cdiv(rows, block_rows)

    kernel = functools.partial(
        _bce_partial_kernel, total_rows=rows, block_rows=block_rows)

    partials = pl.pallas_call(
        kernel,
        out_shape=jax.ShapeDtypeStruct((num_blocks, 1, LANES), jnp.float32),
        grid=(num_blocks,),
        in_specs=[
            pl.BlockSpec((block_rows, LANES), lambda i: (i, 0)),
            pl.BlockSpec((block_rows, LANES), lambda i: (i, 0)),
        ],
        out_specs=pl.BlockSpec((1, 1, LANES), lambda i: (i, 0, 0)),
        compiler_params=pltpu.CompilerParams(
            # Independent blocks: lets v7x's two TensorCores split the stream.
            dimension_semantics=("parallel",),
            vmem_limit_bytes=VMEM_LIMIT_BYTES,
        ),
    )(x2, t2)

    # Tiny epilogue over num_blocks lane-dense partials.
    return jnp.sum(partials)


def custom_bce_loss(inputs, targets, weight=1.0, reduction='mean',
                    min_kernel_elems=SMALL_INPUT_FALLBACK_ELEMS):
    """Pallas TPU implementation of CustomBCELoss.forward."""
    x = jnp.reshape(inputs, (-1,))   # original dtype end-to-end; kernel casts
    t = jnp.reshape(targets, (-1,))
    n = x.shape[0]

    aligned = (n // LANES) * LANES

    if n < min_kernel_elems or aligned == 0:
        # Small-input fallback: launch cost would dominate; do it in plain jnp.
        core_sum = jnp.sum(_bce_core(x, t))
    else:
        # Kernel handles the lane-aligned prefix (copy-free reshape when n is
        # a multiple of 128); the <=127-element tail goes into the epilogue.
        # TODO(synk): on ragged sizes the contiguous-prefix slice may still
        # cost one copy if XLA does not lower it to a bitcast.
        if aligned == n:
            xp, tp = x, t
        else:
            xp, tp = x[:aligned], t[:aligned]
        core_sum = _bce_core_sum_pallas(
            xp.reshape(aligned // LANES, LANES),
            tp.reshape(aligned // LANES, LANES))
        if aligned != n:
            core_sum = core_sum + jnp.sum(_bce_core(x[aligned:], t[aligned:]))

    # Weight / n stay outside the kernel: changing them never recompiles.
    loss_sum = -weight * core_sum
    if reduction == 'mean':
        return loss_sum / n
    elif reduction == 'sum':
        return loss_sum
    else:
        raise ValueError(f"unsupported reduction: {reduction!r}")


def _reference(inputs, targets, weight=1.0, reduction='mean'):
    """Direct transcription of the PyTorch module (log2, clamp to [-100,100])."""
    x = jnp.reshape(inputs, (-1,)).astype(jnp.float32)
    t = jnp.reshape(targets, (-1,)).astype(jnp.float32)
    logx = jnp.clip(jnp.log2(x), -100.0, 100.0)
    loginvx = jnp.clip(jnp.log2(1.0 - x), -100.0, 100.0)
    loss = -weight * (t * logx + (1.0 - t) * loginvx)
    return loss.mean() if reduction == 'mean' else loss.sum()


if __name__ == "__main__":
    key = jax.random.PRNGKey(0)
    ks = jax.random.split(key, 8)

    # --- Primary small case (sigmoid outputs, NCHW). Force the kernel path
    # (min_kernel_elems=0) so the pallas_call itself is exercised here.
    shape = (2, 4, 16, 16)
    x1 = jax.random.uniform(ks[0], shape, jnp.float32, minval=0.01, maxval=0.99)
    t1 = (jax.random.uniform(ks[1], shape, jnp.float32) > 0.5).astype(jnp.float32)

    out_mean = jax.block_until_ready(
        custom_bce_loss(x1, t1, 1.0, 'mean', min_kernel_elems=0))
    out_sum = jax.block_until_ready(
        custom_bce_loss(x1, t1, 2.0, 'sum', min_kernel_elems=0))
    ref_mean = _reference(x1, t1, 1.0, 'mean')
    ref_sum = _reference(x1, t1, 2.0, 'sum')
    assert jnp.allclose(out_mean, ref_mean, rtol=1e-5, atol=1e-5), (out_mean, ref_mean)
    assert jnp.allclose(out_sum, ref_sum, rtol=1e-5, atol=1e-2), (out_sum, ref_sum)

    # Same small case through the default small-input fallback path.
    out_fb = jax.block_until_ready(custom_bce_loss(x1, t1, 1.0, 'mean'))
    assert jnp.allclose(out_fb, ref_mean, rtol=1e-5, atol=1e-5), (out_fb, ref_mean)

    # --- bf16 inputs through the kernel (dtype-aware block sizing path).
    x1b = x1.astype(jnp.bfloat16)
    t1b = t1.astype(jnp.bfloat16)
    out_bf = jax.block_until_ready(
        custom_bce_loss(x1b, t1b, 1.0, 'mean', min_kernel_elems=0))
    ref_bf = _reference(x1b, t1b, 1.0, 'mean')
    assert jnp.allclose(out_bf, ref_bf, rtol=1e-4, atol=1e-4), (out_bf, ref_bf)

    # --- Size not a multiple of 128: exercises the aligned-prefix + jnp-tail
    # path (no pad copies), single full-dim block.
    shape2 = (2, 300, 500)  # 300000 elems -> 2343 aligned rows + 96-elem tail
    x2 = jax.random.uniform(ks[2], shape2, jnp.float32, minval=0.01, maxval=0.99)
    t2 = (jax.random.uniform(ks[3], shape2, jnp.float32) > 0.5).astype(jnp.float32)
    out2 = jax.block_until_ready(custom_bce_loss(x2, t2, 1.0, 'mean'))
    ref2 = _reference(x2, t2, 1.0, 'mean')
    assert jnp.allclose(out2, ref2, rtol=1e-4, atol=1e-5), (out2, ref2)

    # --- Multi-block case with a ragged last block: 1,126,400 elems ->
    # 8800 rows -> two 8192-row blocks, last block row-masked, no tail.
    shape3 = (1, 1100, 1024)
    x3 = jax.random.uniform(ks[4], shape3, jnp.float32, minval=0.01, maxval=0.99)
    t3 = (jax.random.uniform(ks[5], shape3, jnp.float32) > 0.5).astype(jnp.float32)
    out3 = jax.block_until_ready(custom_bce_loss(x3, t3, 1.5, 'mean'))
    ref3 = _reference(x3, t3, 1.5, 'mean')
    assert jnp.allclose(out3, ref3, rtol=1e-4, atol=1e-5), (out3, ref3)

    print("KERNEL_OK")
</pallas_src>

<mosaic_0001>
module attributes {stable_mosaic.version = 11 : i64} {
  func.func @_bce_partial_kernel(%arg0: i32, %arg1: memref<16x128xf32, #tpu.memory_space<vmem>>, %arg2: memref<16x128xf32, #tpu.memory_space<vmem>>, %arg3: memref<1x1x128xf32, #tpu.memory_space<vmem>>) attributes {dimension_semantics = [#tpu.dimension_semantics<parallel>], iteration_bounds = array<i64: 1>, scalar_prefetch = 0 : i64, scratch_operands = 0 : i64, tpu.core_type = #tpu.core_type<tc>, window_params = [{transform_indices = @transform_0, window_bounds = array<i64: 16, 128>}, {transform_indices = @transform_1, window_bounds = array<i64: 16, 128>}, {transform_indices = @transform_2, window_bounds = array<i64: 1, 1, 128>}]} {
    %c0 = arith.constant 0 : index
    %c0_0 = arith.constant 0 : index
    %0 = vector.load %arg1[%c0, %c0_0] : memref<16x128xf32, #tpu.memory_space<vmem>>, vector<16x128xf32>
    %c0_1 = arith.constant 0 : index
    %c0_2 = arith.constant 0 : index
    %1 = vector.load %arg2[%c0_1, %c0_2] : memref<16x128xf32, #tpu.memory_space<vmem>>, vector<16x128xf32>
    %2 = math.log %0 : vector<16x128xf32>
    %cst = arith.constant 2.000000e+00 : f32
    %3 = math.log %cst : f32
    %4 = vector.broadcast %3 : f32 to vector<16x128xf32>
    %5 = arith.divf %2, %4 : vector<16x128xf32>
    %cst_3 = arith.constant -1.000000e+02 : f32
    %6 = vector.broadcast %cst_3 : f32 to vector<16x128xf32>
    %7 = arith.maximumf %5, %6 : vector<16x128xf32>
    %cst_4 = arith.constant 1.000000e+00 : f32
    %8 = vector.broadcast %cst_4 : f32 to vector<16x128xf32>
    %9 = arith.subf %8, %0 : vector<16x128xf32>
    %10 = math.log %9 : vector<16x128xf32>
    %cst_5 = arith.constant 2.000000e+00 : f32
    %11 = math.log %cst_5 : f32
    %12 = vector.broadcast %11 : f32 to vector<16x128xf32>
    %13 = arith.divf %10, %12 : vector<16x128xf32>
    %cst_6 = arith.constant -1.000000e+02 : f32
    %14 = vector.broadcast %cst_6 : f32 to vector<16x128xf32>
    %15 = arith.maximumf %13, %14 : vector<16x128xf32>
    %16 = arith.subf %7, %15 : vector<16x128xf32>
    %17 = arith.mulf %1, %16 : vector<16x128xf32>
    %18 = arith.addf %15, %17 : vector<16x128xf32>
    %cst_7 = arith.constant dense<0.000000e+00> : vector<128xf32>
    %19 = vector.multi_reduction <add>, %18, %cst_7 [0] : vector<16x128xf32> to vector<128xf32>
    %20 = vector.shape_cast %19 : vector<128xf32> to vector<1x128xf32>
    %c0_8 = arith.constant 0 : index
    %c0_9 = arith.constant 0 : index
    %c0_10 = arith.constant 0 : index
    %21 = vector.load %arg3[%c0_8, %c0_9, %c0_10] : memref<1x1x128xf32, #tpu.memory_space<vmem>>, vector<1x1x128xf32>
    %22 = vector.shape_cast %21 : vector<1x1x128xf32> to vector<1x128xf32>
    %23 = vector.shape_cast %20 : vector<1x128xf32> to vector<1x1x128xf32>
    tpu.vector_store %arg3[%c0_8, %c0_9, %c0_10], %23 {strides = array<i32>} : memref<1x1x128xf32, #tpu.memory_space<vmem>>, vector<1x1x128xf32>,
    return
  }
  func.func @transform_0(%arg0: i32) -> (i32, i32) {
    %c0_i32 = arith.constant 0 : i32
    %c0_i32_0 = arith.constant 0 : i32
    return %arg0, %c0_i32 : i32, i32
  }
  func.func @transform_1(%arg0: i32) -> (i32, i32) {
    %c0_i32 = arith.constant 0 : i32
    %c0_i32_0 = arith.constant 0 : i32
    return %arg0, %c0_i32 : i32, i32
  }
  func.func @transform_2(%arg0: i32) -> (i32, i32, i32) {
    %c0_i32 = arith.constant 0 : i32
    %c0_i32_0 = arith.constant 0 : i32
    %c0_i32_1 = arith.constant 0 : i32
    return %arg0, %c0_i32, %c0_i32_0 : i32, i32, i32
  }
}

</mosaic_0001>

<bundles_post_ra>
// kernel: tpu_custom_call.1
= control target key start
LH: loop header
LB: loop body
LE: loop exit
PB: predicated region body
PF: predicated region fallthrough
CT: control target
= control target key end

     0   :  { %7 = vsyncpa [#allocation3], 0  ;;  %s229_s0 = inlined_call_operand.hbm [shape: f32[16,128], index: 0, kind: input, shape index: {}]   ;;  %s230_s1 = inlined_call_operand.hbm [shape: f32[16,128], index: 1, kind: input, shape index: {}]   ;;  %s231_s2 = inlined_call_operand.hbm [shape: f32[1,1,128], index: 2, kind: output, shape index: {}]  }
   0x1   :  { %8 = vsyncpa [#allocation6], 0 }
   0x2   :  { %9 = vsyncpa [#allocation4], 0  ;;  %s14_s11 = sshll.u32 %s229_s0, 4  ;;  %s199_s12 = smov [#allocation2]   ;;  %s15_s11 = int_to_ptr.hbm [resolvable:$true] %s14_s11 }
   0x3   :  { %s16_s13 = sshll.u32 %s199_s12, 4  ;;  %s27_s16 = sshll.u32 %s230_s1, 4  ;;  %s17_s13 = int_to_ptr.vmem [resolvable:$true] %s16_s13  ;;  %s28_s16 = int_to_ptr.hbm [resolvable:$true] %s27_s16 }
   0x4   :  { %s200_s17 = smov 128   ;;  %s201_s18 = smov 8  }
   0x5   :  { %22 = dma.hbm_to_vmem [thread:$0]  %s15_s11, 256, %s17_s13, [#allocation3], %s200_s17, %s200_s17, %s201_s18  }
   0x6   :  { %s202_s19 = smov [#allocation5]  }
   0x7   :  { %s29_s20 = sshll.u32 %s202_s19, 4  ;;  %s30_s20 = int_to_ptr.vmem [resolvable:$true] %s29_s20 }
   0x8   :  { %35 = dma.hbm_to_vmem [thread:$0]  %s28_s16, 256, %s30_s20, [#allocation6], %s200_s17, %s200_s17, %s201_s18  }
   0x9   :  { %193 = dma.done.wait [#allocation3], 256  }
   0xa   :  { %194 = vsyncadd [#allocation3], 4294967040 }
   0xb   :  { %195 = dma.done.wait [#allocation6], 256  }
   0xc   :  { %196 = vsyncadd [#allocation6], 4294967040  ;;  %v203_v0 = vmov 0.6931472   ;;  %v44_v2 = vld [vmem:[#allocation2] sm:$0xff]  ;;  %v45_v3 = vld [vmem:[#allocation2 + $0x8] sm:$0xff] }
   0xd   :  { %111 = vrcp.f32 %v203_v0  ;;  %v63_v5 = vsub.f32 1.0, %v44_v2  ;;  %v64_v6 = vsub.f32 1.0, %v45_v3  ;;  %v46_v26 = vld [vmem:[#allocation5] sm:$0xff]  ;;  %v47_v28 = vld [vmem:[#allocation5 + $0x8] sm:$0xff]  ;;  %s204_s0 = smov [#allocation7]   ;;  %s94_s23 = sshll.u32 %s231_s2, 4  ;;  %s95_s23 = int_to_ptr.hbm [resolvable:$true] %s94_s23 }
   0xe   :  { %113 = vlog2.f32 %v44_v2  ;;  %s92_s1 = sshll.u32 %s204_s0, 4  ;;  %s93_s1 = int_to_ptr.vmem [resolvable:$true] %s92_s1 }
   0xf   :  { %115 = vlog2.f32 %v45_v3 }
  0x10   :  { %117 = vlog2.f32 %v63_v5 }
  0x11   :  { %119 = vlog2.f32 %v64_v6 }
  0x13   :  { %v112_v1 = vpop.eup %111 }
  0x14   :  { %v53_v4 = vmul.f32 0.6931472, %v112_v1  ;;  %vm57_vm0 = vweird.f32 %v112_v1  ;;  %v114_v9 = vpop.eup %113 }
  0x15   :  { %v116_v11 = vpop.eup %115  ;;  %v49_v12 = vmul.f32 0.6931472, %v114_v9 }
  0x16   :  { %v54_v7 = vsub.f32 1.0, %v53_v4  ;;  %v118_v13 = vpop.eup %117  ;;  %v51_v14 = vmul.f32 0.6931472, %v116_v11 }
  0x17   :  { %v120_v16 = vpop.eup %119  ;;  %v66_v18 = vmul.f32 0.6931472, %v118_v13 }
  0x18   :  { %v55_v8 = vmul.f32 %v112_v1, %v54_v7  ;;  %v68_v20 = vmul.f32 0.6931472, %v120_v16 }
  0x1a   :  { %v56_v10 = vadd.f32 %v112_v1, %v55_v8 }
  0x1c   :  { %v58_v15 = vsel %vm57_vm0, %v112_v1, %v56_v10 }
  0x1d   :  { %v59_v17 = vmul.f32 %v58_v15, %v49_v12  ;;  %v60_v19 = vmul.f32 %v58_v15, %v51_v14  ;;  %v69_v22 = vmul.f32 %v66_v18, %v58_v15  ;;  %v70_v24 = vmul.f32 %v68_v20, %v58_v15 }
  0x1f   :  { %v61_v21 = vmax.f32 %v59_v17, -100.0  ;;  %v62_v23 = vmax.f32 %v60_v19, -100.0  ;;  %v71_v25 = vmax.f32 %v69_v22, -100.0  ;;  %v72_v27 = vmax.f32 %v70_v24, -100.0 }
  0x21   :  { %v73_v29 = vsub.f32 %v61_v21, %v71_v25  ;;  %v74_v30 = vsub.f32 %v62_v23, %v72_v27 }
  0x23   :  { %v75_v31 = vmul.f32 %v73_v29, %v46_v26  ;;  %v76_v32 = vmul.f32 %v74_v30, %v47_v28 }
  0x25   :  { %v77_v33 = vadd.f32 %v75_v31, %v71_v25  ;;  %v78_v34 = vadd.f32 %v76_v32, %v72_v27 }
  0x27   :  { %v79_v35 = vadd.f32 %v78_v34, %v77_v33 }
  0x29   :  { %v80_v36 = vrot.slane %v79_v35, 4 }
  0x2b   :  { %v81_v37 = vadd.f32 %v80_v36, %v79_v35 }
  0x2d   :  { %v82_v38 = vrot.slane %v81_v37, 2 }
  0x2f   :  { %v83_v39 = vadd.f32 %v82_v38, %v81_v37 }
  0x31   :  { %v84_v40 = vrot.slane %v83_v39, 1 }
  0x33   :  { %v85_v41 = vadd.f32 %v84_v40, %v83_v39 }
  0x35   :  { %86 = vst [vmem:[#allocation7] sm:$0x1] %v85_v41 }
  0x36   :  { %97 = dma.vmem_to_hbm [thread:$0]  %s93_s1, 16, %s95_s23, [#allocation4]  }
  0x37   :  { %197 = dma.done.wait [#allocation4], 16  }
  0x38   :  { %198 = vsyncadd [#allocation4], 4294967280 }
  0x39   :  { %102 = vsyncpa [#allocation3], 1 }
  0x3a   :  { %103 = vsyncpa [#allocation6], 1 }
  0x3b   :  { %104 = vsyncpa [#allocation4], 1 }

</bundles_post_ra>
